<compile_context>
chip_gen: v7x
topology: tpu7x:2x2x1
jax: 0.10.0
libtpu: 0.0.40
codegen_flags: <defaults>
</compile_context>

<pallas_src>
import jax
import jax.numpy as jnp
from jax import lax
from jax.experimental import pallas as pl
from jax.experimental.pallas import tpu as pltpu

# LIF parameters (LIFParameters defaults in the module)
TAU_SYN_INV = 0.5
TAU_MEM_INV = 0.5
V_TH = 1.0
V_RESET = 0.0
INHIBITION_STRENGTH = -5.0
N_NEURONS = 4


def _round_up(x, m):
    return (x + m - 1) // m * m


def _largest_tile(total, unit, cap):
    """Largest multiple of `unit` that divides `total` and is <= cap.
    Assumes `unit` divides `total` and cap >= unit."""
    n = total // unit
    for m in range(min(cap // unit, n), 0, -1):
        if n % m == 0:
            return m * unit
    return unit


def _vmem_limit_bytes():
    # Generation-aware scoped-VMEM limit: ~3/4 of physical capacity
    # (96 MiB on v5e/v6e's 128 MiB, 48 MiB on v7x's 64 MiB); conservative
    # fallback if the query is unavailable.
    try:
        cap = int(pltpu.get_tpu_info().vmem_capacity_bytes)
    except Exception:  # pragma: no cover - defensive fallback
        cap = 64 * 1024 * 1024
    return min(cap * 3 // 4, 96 * 1024 * 1024)


def snn_kernel(x_ref, w_ref, v_ref, i_ref, out_ref, acc_ref):
    k = pl.program_id(1)
    nk = pl.num_programs(1)

    # --- init accumulator at the start of each K reduction ---
    @pl.when(k == 0)
    def _():
        acc_ref[...] = jnp.zeros_like(acc_ref)

    # --- Linear (bias=False): x [tm, tk] against the weight kept in its
    #     native PyTorch (N, D) layout -> lane-dense (N, tk) block.  MXU
    #     matmul with f32 accumulation. ---
    acc_ref[...] += lax.dot_general(
        x_ref[...], w_ref[...],
        dimension_numbers=(((1,), (1,)), ((), ())),
        preferred_element_type=jnp.float32)
    # TODO(synk): if bundle dumps show the vmatmul cadence binding before the
    # x DMA (N=4 -> ~1.6-3% MXU utilization), replace the MXU dot with a VPU
    # broadcast-multiply-accumulate into lane-partial accumulators plus one
    # cross-lane reduce in the epilogue.

    # --- LIF + winner-take-all epilogue, only after the full D reduction ---
    @pl.when(k == nk - 1)
    def _():
        cur = acc_ref[...]                     # [tm, N] f32
        i_old = i_ref[...]
        v_old = v_ref[...]

        # custom_lif_step
        i_new = i_old + TAU_SYN_INV * (cur - i_old)
        v_new = v_old + TAU_MEM_INV * (i_new - v_old)
        z = (v_new >= V_TH).astype(jnp.float32)
        v_before_reset = v_new
        v_after_reset = jnp.where(z > 0, jnp.float32(V_RESET), v_new)

        # lateral inhibition (winner-take-all per batch row)
        tm, n = z.shape
        spiked = z > 0
        any_spike = jnp.max(z, axis=-1, keepdims=True) > 0

        neg_big = jnp.float32(-1e30)
        masked_v = jnp.where(spiked, v_before_reset, neg_big)
        max_val = jnp.max(masked_v, axis=-1, keepdims=True)
        idx = lax.broadcasted_iota(jnp.int32, (tm, n), 1)
        # first-index tie-break among spiked neurons == torch.max semantics;
        # comparison stays on the same accumulator values as the max.
        is_max = (masked_v == max_val) & spiked
        winner_pos = jnp.min(jnp.where(is_max, idx, jnp.int32(n)),
                             axis=-1, keepdims=True)
        is_winner = idx == winner_pos

        new_v = jnp.where(
            any_spike,
            jnp.where(is_winner, v_after_reset,
                      jnp.float32(INHIBITION_STRENGTH)),
            v_after_reset,
        )

        # single packed output (z | v | i): one writeback DMA per B tile
        out_ref[...] = jnp.concatenate([z, new_v, i_new], axis=-1)


def snn_forward(x_nchw, w, state=None, *, stream_dtype=jnp.bfloat16,
                tm_target=512):
    """x_nchw: [B, C, H, W]; w: [N, D] (PyTorch nn.Linear weight layout).
    Returns (z, (z, new_v, new_i)) mirroring the module's (z, new_state).

    stream_dtype: dtype x and w are streamed from HBM in.  bf16 (default)
    halves HBM traffic and MXU passes vs f32; since z = (v >= 1.0) is a hard
    threshold, borderline spikes/winners can differ from a strict f32
    reference -- pass stream_dtype=jnp.float32 for f32-faithful numerics.
    Hand x/w to this function already in stream_dtype to avoid an extra XLA
    read+write cast pass over x."""
    B = int(x_nchw.shape[0])
    D = int(x_nchw.shape[1] * x_nchw.shape[2] * x_nchw.shape[3])
    N = N_NEURONS

    x_flat = jnp.reshape(x_nchw, (B, D)).astype(stream_dtype)   # nn.Flatten
    w2 = jnp.asarray(w).astype(stream_dtype)                    # keep (N, D)

    if state is None:
        v0 = jnp.zeros((B, N), jnp.float32)
        i0 = jnp.zeros((B, N), jnp.float32)
    else:
        _, v0, i0 = state
        v0 = v0.astype(jnp.float32)
        i0 = i0.astype(jnp.float32)

    itemsize = jnp.dtype(stream_dtype).itemsize
    vmem_limit = _vmem_limit_bytes()
    x_budget = vmem_limit // 2           # budget for x's double buffer

    # --- B tiling: never pay a padded HBM copy for the batch axis ---
    if B % 8 == 0:
        tm = _largest_tile(B, 8, min(tm_target, B))
        # keep >= 2 blocks on the "parallel" B axis so v7x's 2nd TensorCore
        # gets work (no-op on single-core v5e/v6e)
        if B // tm < 2 and B >= 16:
            tm = _largest_tile(B, 8, B // 2)
    else:
        # full-extent B block (allowed: equals the array dim) avoids padding
        # for small / odd batches.
        # TODO(synk): for large B not divisible by 8, pad B to a multiple of
        # 8 so the B axis still tiles and parallelizes.
        tm = B

    # --- K tiling: as large as the VMEM budget allows, divisor of D_pad ---
    tk_cap = max(128, x_budget // (2 * tm * itemsize))
    if D % 128 == 0:
        D_pad = D
        tk = _largest_tile(D, 128, min(tk_cap, D))
    elif D <= tk_cap:
        D_pad = D
        tk = D                # full-extent K block: no padded copy of x
    else:
        D_pad = _round_up(D, 128)
        tk = _largest_tile(D_pad, 128, min(tk_cap, D_pad))

    if D_pad != D:            # zero pad contributes 0 to the accumulation
        x_flat = jnp.pad(x_flat, ((0, 0), (0, D_pad - D)))
        w2 = jnp.pad(w2, ((0, 0), (0, D_pad - D)))

    grid = (B // tm, D_pad // tk)

    out = pl.pallas_call(
        snn_kernel,
        out_shape=jax.ShapeDtypeStruct((B, 3 * N), jnp.float32),
        grid_spec=pltpu.PrefetchScalarGridSpec(
            num_scalar_prefetch=0,
            grid=grid,
            in_specs=[
                # x: streamed (tm, tk) tile per (B tile, K tile)
                pl.BlockSpec((tm, tk), lambda i, k: (i, k)),
                # weight in native (N, D) layout: lane-dense block, depends
                # only on k (not re-fetched across B tiles within a step)
                pl.BlockSpec((N, tk), lambda i, k: (0, k)),
                # LIF state: resident across the K reduction
                pl.BlockSpec((tm, N), lambda i, k: (i, 0)),
                pl.BlockSpec((tm, N), lambda i, k: (i, 0)),
            ],
            # packed output resident across K; written only on the last K step
            out_specs=pl.BlockSpec((tm, 3 * N), lambda i, k: (i, 0)),
            scratch_shapes=[pltpu.VMEM((tm, N), jnp.float32)],
        ),
        compiler_params=pltpu.CompilerParams(
            dimension_semantics=("parallel", "arbitrary"),
            vmem_limit_bytes=int(vmem_limit),
        ),
    )(x_flat, w2, v0, i0)

    z = out[:, 0:N]
    new_v = out[:, N:2 * N]
    new_i = out[:, 2 * N:3 * N]
    return z, (z, new_v, new_i)


def snn_forward_ref(x_nchw, w, state=None):
    """Pure-JAX reference mirroring the PyTorch module (f32 math on the
    given inputs)."""
    B = x_nchw.shape[0]
    D = x_nchw.shape[1] * x_nchw.shape[2] * x_nchw.shape[3]
    x = jnp.reshape(x_nchw, (B, D)).astype(jnp.float32)
    w32 = jnp.asarray(w).astype(jnp.float32)
    cur = jnp.dot(x, w32.T, precision=lax.Precision.HIGHEST)
    if state is None:
        v0 = jnp.zeros((B, N_NEURONS), jnp.float32)
        i0 = jnp.zeros((B, N_NEURONS), jnp.float32)
    else:
        _, v0, i0 = state
        v0 = v0.astype(jnp.float32)
        i0 = i0.astype(jnp.float32)
    i_new = i0 + TAU_SYN_INV * (cur - i0)
    v_new = v0 + TAU_MEM_INV * (i_new - v0)
    z = (v_new >= V_TH).astype(jnp.float32)
    v_before = v_new
    v_after = jnp.where(z > 0, V_RESET, v_new)
    spiked = z > 0
    any_spike = jnp.any(spiked, axis=-1, keepdims=True)
    masked_v = jnp.where(spiked, v_before, -1e30)
    max_val = jnp.max(masked_v, axis=-1, keepdims=True)
    idx = jnp.arange(N_NEURONS)[None, :]
    is_max = (masked_v == max_val) & spiked
    winner = jnp.min(jnp.where(is_max, idx, N_NEURONS), axis=-1, keepdims=True)
    is_winner = idx == winner
    new_v = jnp.where(any_spike,
                      jnp.where(is_winner, v_after, INHIBITION_STRENGTH),
                      v_after)
    return z, (z, new_v, i_new)


if __name__ == "__main__":
    key = jax.random.PRNGKey(0)
    kx, kw = jax.random.split(key)

    # small shapes consistent with the module: input_shape = (C, H, W)
    B, C, H, W = 2, 4, 16, 16
    D = C * H * W

    x = jax.random.uniform(kx, (B, C, H, W), jnp.float32)
    # PyTorch-default-like uniform init in [-1/sqrt(D), 1/sqrt(D)], scaled up
    # so some neurons actually spike and the WTA path is exercised.
    bound = 1.0 / jnp.sqrt(jnp.float32(D))
    w = jax.random.uniform(kw, (N_NEURONS, D), jnp.float32,
                           minval=-bound, maxval=bound) * 8.0

    # Push the streaming-dtype cast upstream (review): hand the kernel bf16
    # inputs directly so the wrapper's astype is a no-op.
    x_bf16 = x.astype(jnp.bfloat16)
    w_bf16 = w.astype(jnp.bfloat16)

    z, new_state = snn_forward(x_bf16, w_bf16, state=None)
    jax.block_until_ready(z)
    jax.block_until_ready(new_state)

    # correctness check against a pure-JAX reference on the SAME bf16-rounded
    # inputs (hard threshold + argmax are only comparable on identical
    # pre-activation inputs).
    z_r, (_, v_r, i_r) = snn_forward_ref(x_bf16, w_bf16, state=None)
    assert jnp.allclose(z, z_r, atol=1e-4), "z mismatch"
    assert jnp.allclose(new_state[1], v_r, atol=1e-4), "v mismatch"
    assert jnp.allclose(new_state[2], i_r, atol=1e-4), "i mismatch"

    print("KERNEL_OK")
</pallas_src>

<mosaic_0001>
module attributes {stable_mosaic.version = 11 : i64} {
  func.func @snn_kernel(%arg0: i32, %arg1: i32, %arg2: memref<2x1024xbf16, #tpu.memory_space<vmem>>, %arg3: memref<4x1024xbf16, #tpu.memory_space<vmem>>, %arg4: memref<2x4xf32, #tpu.memory_space<vmem>>, %arg5: memref<2x4xf32, #tpu.memory_space<vmem>>, %arg6: memref<2x12xf32, #tpu.memory_space<vmem>>, %arg7: memref<2x4xf32, #tpu.memory_space<vmem>>) attributes {dimension_semantics = [#tpu.dimension_semantics<parallel>, #tpu.dimension_semantics<arbitrary>], iteration_bounds = array<i64: 1, 1>, scalar_prefetch = 0 : i64, scratch_operands = 1 : i64, tpu.core_type = #tpu.core_type<tc>, window_params = [{transform_indices = @transform_0, window_bounds = array<i64: 2, 1024>}, {transform_indices = @transform_1, window_bounds = array<i64: 4, 1024>}, {transform_indices = @transform_2, window_bounds = array<i64: 2, 4>}, {transform_indices = @transform_3, window_bounds = array<i64: 2, 4>}, {transform_indices = @transform_4, window_bounds = array<i64: 2, 12>}]} {
    %c0_i32 = arith.constant 0 : i32
    %0 = arith.cmpi eq, %arg1, %c0_i32 : i32
    %1 = arith.extui %0 : i1 to i32
    %c0_i32_0 = arith.constant 0 : i32
    %2 = arith.cmpi ne, %1, %c0_i32_0 : i32
    scf.if %2 {
      %cst_10 = arith.constant 0.000000e+00 : f32
      %12 = vector.broadcast %cst_10 : f32 to vector<2x4xf32>
      %c0_11 = arith.constant 0 : index
      %c0_12 = arith.constant 0 : index
      %13 = vector.load %arg7[%c0_11, %c0_12] : memref<2x4xf32, #tpu.memory_space<vmem>>, vector<2x4xf32>
      tpu.vector_store %arg7[%c0_11, %c0_12], %12 {strides = array<i32>} : memref<2x4xf32, #tpu.memory_space<vmem>>, vector<2x4xf32>,
    } else {
    }
    %c0 = arith.constant 0 : index
    %c0_1 = arith.constant 0 : index
    %3 = vector.load %arg7[%c0, %c0_1] : memref<2x4xf32, #tpu.memory_space<vmem>>, vector<2x4xf32>
    %c0_2 = arith.constant 0 : index
    %c0_3 = arith.constant 0 : index
    %4 = vector.load %arg2[%c0_2, %c0_3] : memref<2x1024xbf16, #tpu.memory_space<vmem>>, vector<2x1024xbf16>
    %c0_4 = arith.constant 0 : index
    %c0_5 = arith.constant 0 : index
    %5 = vector.load %arg3[%c0_4, %c0_5] : memref<4x1024xbf16, #tpu.memory_space<vmem>>, vector<4x1024xbf16>
    %cst = arith.constant dense<0.000000e+00> : vector<2x4xf32>
    %6 = tpu.matmul %4, %5, %cst {dimension_numbers = #tpu.dot_dimension_numbers<[1], [1], [0], [0], [0, 0, 1, 0], [], []>} : vector<2x1024xbf16>, vector<4x1024xbf16>, vector<2x4xf32> -> vector<2x4xf32>
    %7 = arith.addf %3, %6 : vector<2x4xf32>
    %c0_6 = arith.constant 0 : index
    %c0_7 = arith.constant 0 : index
    %8 = vector.load %arg7[%c0_6, %c0_7] : memref<2x4xf32, #tpu.memory_space<vmem>>, vector<2x4xf32>
    tpu.vector_store %arg7[%c0_6, %c0_7], %7 {strides = array<i32>} : memref<2x4xf32, #tpu.memory_space<vmem>>, vector<2x4xf32>,
    %c0_i32_8 = arith.constant 0 : i32
    %9 = arith.cmpi eq, %arg1, %c0_i32_8 : i32
    %10 = arith.extui %9 : i1 to i32
    %c0_i32_9 = arith.constant 0 : i32
    %11 = arith.cmpi ne, %10, %c0_i32_9 : i32
    scf.if %11 {
      %c0_10 = arith.constant 0 : index
      %c0_11 = arith.constant 0 : index
      %12 = vector.load %arg7[%c0_10, %c0_11] : memref<2x4xf32, #tpu.memory_space<vmem>>, vector<2x4xf32>
      %c0_12 = arith.constant 0 : index
      %c0_13 = arith.constant 0 : index
      %13 = vector.load %arg5[%c0_12, %c0_13] : memref<2x4xf32, #tpu.memory_space<vmem>>, vector<2x4xf32>
      %c0_14 = arith.constant 0 : index
      %c0_15 = arith.constant 0 : index
      %14 = vector.load %arg4[%c0_14, %c0_15] : memref<2x4xf32, #tpu.memory_space<vmem>>, vector<2x4xf32>
      %15 = arith.subf %12, %13 : vector<2x4xf32>
      %cst_16 = arith.constant 5.000000e-01 : f32
      %16 = vector.broadcast %cst_16 : f32 to vector<2x4xf32>
      %17 = arith.mulf %16, %15 : vector<2x4xf32>
      %18 = arith.addf %13, %17 : vector<2x4xf32>
      %19 = arith.subf %18, %14 : vector<2x4xf32>
      %cst_17 = arith.constant 5.000000e-01 : f32
      %20 = vector.broadcast %cst_17 : f32 to vector<2x4xf32>
      %21 = arith.mulf %20, %19 : vector<2x4xf32>
      %22 = arith.addf %14, %21 : vector<2x4xf32>
      %cst_18 = arith.constant 1.000000e+00 : f32
      %23 = vector.broadcast %cst_18 : f32 to vector<2x4xf32>
      %24 = arith.cmpf oge, %22, %23 : vector<2x4xf32>
      %25 = arith.extui %24 : vector<2x4xi1> to vector<2x4xi32>
      %26 = arith.sitofp %25 : vector<2x4xi32> to vector<2x4xf32>
      %cst_19 = arith.constant 0.000000e+00 : f32
      %27 = vector.broadcast %cst_19 : f32 to vector<2x4xf32>
      %28 = arith.cmpf ogt, %26, %27 : vector<2x4xf32>
      %cst_20 = arith.constant 0.000000e+00 : f32
      %29 = vector.broadcast %cst_20 : f32 to vector<2x4xf32>
      %30 = arith.select %28, %29, %22 : vector<2x4xi1>, vector<2x4xf32>
      %cst_21 = arith.constant 0.000000e+00 : f32
      %31 = vector.broadcast %cst_21 : f32 to vector<2x4xf32>
      %32 = arith.cmpf ogt, %26, %31 : vector<2x4xf32>
      %cst_22 = arith.constant dense<0xFF800000> : vector<2xf32>
      %33 = vector.multi_reduction <maximumf>, %26, %cst_22 [1] : vector<2x4xf32> to vector<2xf32>
      %34 = vector.shape_cast %33 : vector<2xf32> to vector<2x1xf32>
      %cst_23 = arith.constant 0.000000e+00 : f32
      %35 = vector.broadcast %cst_23 : f32 to vector<2x1xf32>
      %36 = arith.cmpf ogt, %34, %35 : vector<2x1xf32>
      %cst_24 = arith.constant -1.000000e+30 : f32
      %37 = vector.broadcast %cst_24 : f32 to vector<2x4xf32>
      %38 = arith.select %32, %22, %37 : vector<2x4xi1>, vector<2x4xf32>
      %cst_25 = arith.constant dense<0xFF800000> : vector<2xf32>
      %39 = vector.multi_reduction <maximumf>, %38, %cst_25 [1] : vector<2x4xf32> to vector<2xf32>
      %40 = vector.shape_cast %39 : vector<2xf32> to vector<2x1xf32>
      %41 = tpu.iota {dimensions = array<i32: 1>} : vector<2x4xi32>
      %42 = vector.broadcast %40 : vector<2x1xf32> to vector<2x4xf32>
      %43 = arith.cmpf oeq, %38, %42 : vector<2x4xf32>
      %44 = arith.andi %43, %32 : vector<2x4xi1>
      %c4_i32 = arith.constant 4 : i32
      %45 = vector.broadcast %c4_i32 : i32 to vector<2x4xi32>
      %46 = arith.select %44, %41, %45 : vector<2x4xi1>, vector<2x4xi32>
      %cst_26 = arith.constant dense<2147483647> : vector<2xi32>
      %47 = vector.multi_reduction <minsi>, %46, %cst_26 [1] : vector<2x4xi32> to vector<2xi32>
      %48 = vector.shape_cast %47 : vector<2xi32> to vector<2x1xi32>
      %49 = vector.broadcast %48 : vector<2x1xi32> to vector<2x4xi32>
      %50 = arith.cmpi eq, %41, %49 : vector<2x4xi32>
      %cst_27 = arith.constant -5.000000e+00 : f32
      %51 = vector.broadcast %cst_27 : f32 to vector<2x4xf32>
      %52 = arith.select %50, %30, %51 : vector<2x4xi1>, vector<2x4xf32>
      %53 = vector.shape_cast %36 : vector<2x1xi1> to vector<2x1xi1>
      %54 = vector.broadcast %53 : vector<2x1xi1> to vector<2x4xi1>
      %55 = arith.select %54, %52, %30 : vector<2x4xi1>, vector<2x4xf32>
      %56 = tpu.concatenate %26, %55, %18 in 1 : vector<2x4xf32>, vector<2x4xf32>, vector<2x4xf32> -> vector<2x12xf32>
      %c0_28 = arith.constant 0 : index
      %c0_29 = arith.constant 0 : index
      %57 = vector.load %arg6[%c0_28, %c0_29] : memref<2x12xf32, #tpu.memory_space<vmem>>, vector<2x12xf32>
      tpu.vector_store %arg6[%c0_28, %c0_29], %56 {strides = array<i32>} : memref<2x12xf32, #tpu.memory_space<vmem>>, vector<2x12xf32>,
    } else {
    }
    return
  }
  func.func @transform_0(%arg0: i32, %arg1: i32) -> (i32, i32) {
    %c0_i32 = arith.constant 0 : i32
    return %arg0, %arg1 : i32, i32
  }
  func.func @transform_1(%arg0: i32, %arg1: i32) -> (i32, i32) {
    %c0_i32 = arith.constant 0 : i32
    %c0_i32_0 = arith.constant 0 : i32
    return %c0_i32, %arg1 : i32, i32
  }
  func.func @transform_2(%arg0: i32, %arg1: i32) -> (i32, i32) {
    %c0_i32 = arith.constant 0 : i32
    %c0_i32_0 = arith.constant 0 : i32
    return %arg0, %c0_i32 : i32, i32
  }
  func.func @transform_3(%arg0: i32, %arg1: i32) -> (i32, i32) {
    %c0_i32 = arith.constant 0 : i32
    %c0_i32_0 = arith.constant 0 : i32
    return %arg0, %c0_i32 : i32, i32
  }
  func.func @transform_4(%arg0: i32, %arg1: i32) -> (i32, i32) {
    %c0_i32 = arith.constant 0 : i32
    %c0_i32_0 = arith.constant 0 : i32
    return %arg0, %c0_i32 : i32, i32
  }
}

</mosaic_0001>

<bundles_post_ra>
// kernel: tpu_custom_call.1
= control target key start
LH: loop header
LB: loop body
LE: loop exit
PB: predicated region body
PF: predicated region fallthrough
CT: control target
= control target key end

     0   :  { %9 = vsyncpa [#allocation4], 0  ;;  %s567_s0 = inlined_call_operand.hbm [shape: bf16[2,1024], index: 0, kind: input, shape index: {}]   ;;  %s568_s1 = inlined_call_operand.hbm [shape: bf16[4,1024], index: 1, kind: input, shape index: {}]   ;;  %s569_s2 = inlined_call_operand.vmem [shape: f32[2,4], index: 2, kind: input, shape index: {}]   ;;  %s570_s3 = inlined_call_operand.vmem [shape: f32[2,4], index: 3, kind: input, shape index: {}]   ;;  %s571_s4 = inlined_call_operand.hbm [shape: f32[2,12], index: 4, kind: output, shape index: {}]  }
   0x1   :  { %10 = vsyncpa [#allocation7], 0 }
   0x2   :  { %11 = vsyncpa [#allocation5], 0  ;;  %s482_s15 = smov [#allocation3]   ;;  %s483_s17 = smov [#allocation6]  }
   0x3   :  { %s18_s16 = sshll.u32 %s482_s15, 4  ;;  %s28_s18 = sshll.u32 %s483_s17, 4  ;;  %s19_s16 = int_to_ptr.vmem [resolvable:$true] %s18_s16  ;;  %s29_s18 = int_to_ptr.vmem [resolvable:$true] %s28_s18 }
   0x4   :  { %s410_s21 = scalar_lea.hbm %s567_s0, 128 }
   0x5   :  { %p411_p0 = scmp.ne.s32.totalorder %s567_s0, %s410_s21  ;;  %p414_p1 = scmp.lt.u32.totalorder %s410_s21, %s567_s0 }
   0x7   :  { %p416_p2 = pnand %p414_p1, %p411_p0 }
   0x9   :  { %419 = shalt.err (!%p416_p2)
}
   0xa   :  { %s420_s26 = scalar_lea.vmem %s19_s16, 128  ;;  %p425_p4 = scmp.lt.s32.totalorder %s19_s16, %s19_s16 }
   0xb   :  { %p421_p3 = scmp.ne.s32.totalorder %s19_s16, %s420_s26  ;;  %p426_p5 = scmp.lt.s32.totalorder %s420_s26, %s420_s26 }
   0xd   :  { %p427_p6 = por %p426_p5, %p425_p4 }
   0xf   :  { %p428_p7 = pnand %p427_p6, %p421_p3 }
  0x11   :  { %431 = shalt.err (!%p428_p7)
}
  0x12   :  { %21 = dma.hbm_to_vmem [thread:$0]  %s567_s0, 128, %s19_s16, [#allocation4]  }
  0x13   :  { %s432_s5 = scalar_lea.hbm %s568_s1, 256 }
  0x14   :  { %p433_p8 = scmp.ne.s32.totalorder %s568_s1, %s432_s5  ;;  %p436_p9 = scmp.lt.u32.totalorder %s432_s5, %s568_s1 }
  0x16   :  { %p438_p10 = pnand %p436_p9, %p433_p8 }
  0x18   :  { %441 = shalt.err (!%p438_p10)
}
  0x19   :  { %s442_s10 = scalar_lea.vmem %s29_s18, 256  ;;  %p447_p12 = scmp.lt.s32.totalorder %s29_s18, %s29_s18 }
  0x1a   :  { %p443_p11 = scmp.ne.s32.totalorder %s29_s18, %s442_s10  ;;  %p448_p13 = scmp.lt.s32.totalorder %s442_s10, %s442_s10 }
  0x1c   :  { %p449_p0 = por %p448_p13, %p447_p12 }
  0x1e   :  { %p450_p1 = pnand %p449_p0, %p443_p11 }
  0x20   :  { %453 = shalt.err (!%p450_p1)
}
  0x21   :  { %31 = dma.hbm_to_vmem [thread:$0]  %s568_s1, 256, %s29_s18, [#allocation7]  }
  0x22   :  { %476 = dma.done.wait [#allocation4], 128  }
  0x23   :  { %477 = vsyncadd [#allocation4], 4294967168 }
  0x24   :  { %478 = dma.done.wait [#allocation7], 256  }
  0x25   :  { %479 = vsyncadd [#allocation7], 4294967040  ;;  %v58_v0 = vlaneseq  ;;  %v484_v1 = vmov 1966171168   ;;  %v485_v3 = vmov 1983009808  }
  0x26   :  { %v56_v2 = vunpack.c.l.s4 %v484_v1  ;;  %v115_v4 = vunpack.c.l.s4 %v485_v3  ;;  %v51_v10 = vld [vmem:[#allocation6] sm:$0xff]  ;;  %v50_v11 = vld [vmem:[#allocation3] sm:$0xff]  ;;  %v52_v12 = vld [vmem:[#allocation6 + $0x8] sm:$0xff]  ;;  %vm47_vm0 = vcmask 25600   ;;  %v486_v36 = vmov 0.0   ;;  %s489_s15 = smov [#allocation8]  }
  0x27   :  { %v59_v5 = vshrl.u32 %v58_v0, 7  ;;  %v113_v14 = vcombine.high %v51_v10, %v51_v10  ;;  %v54_v15 = vcombine.high %v50_v11, %v50_v11  ;;  %v130_v18 = vcombine.high %v52_v12, %v52_v12  ;;  %48 = vst.msk [vmem:[#allocation2] sm:$0x3] %vm47_vm0, %v486_v36  ;;  %v322_v58 = vld [vmem:[%s570_s3] sm:$0x3]  ;;  %s488_s3 = smov 4  }
  0x28   :  { %v57_v6 = vunpack.c.0.s8 %v56_v2  ;;  %v116_v7 = vunpack.c.0.s8 %v115_v4  ;;  %v323_v62 = vld [vmem:[%s569_s2] sm:$0x3]  ;;  %s487_s2 = smov 8   ;;  %vm376_vm8 = vcmask 31744   ;;  %s388_s16 = sshll.u32 %s489_s15, 4  ;;  %vm378_vm9 = vcmask 64512   ;;  %s389_s16 = int_to_ptr.vmem [resolvable:$true] %s388_s16 }
  0x29   :  { %vm380_vm10 = vcmask 91136   ;;  %s454_s17 = scalar_lea.vmem %s389_s16, 32  ;;  %p459_p3 = scmp.lt.s32.totalorder %s389_s16, %s389_s16 }
  0x2a   :  { %v60_v8 = vsub.s32 %v57_v6, %v59_v5  ;;  %v119_v9 = vsub.s32 %v116_v7, %v59_v5  ;;  %v344_v7 = vand.u32 127, %v58_v0  ;;  %p455_p2 = scmp.ne.s32.totalorder %s389_s16, %s454_s17  ;;  %p460_p4 = scmp.lt.s32.totalorder %s454_s17, %s454_s17 }
  0x2c   :  { %v120_v13 = vrot.slane %v51_v10, %v119_v9  ;;  %v61_v16 = vrot.slane %v50_v11, %v60_v8  ;;  %v137_v17 = vrot.slane %v52_v12, %v119_v9  ;;  %v127_v20 = vrot.slane %v113_v14, %v119_v9  ;;  %p461_p5 = por %p460_p4, %p459_p3 }
  0x2d   :  { %v144_v23 = vrot.slane %v130_v18, %v119_v9  ;;  %v68_v24 = vrot.slane %v54_v15, %v60_v8 }
  0x2e   :  { %v128_v19 = vcombine.high %v120_v13, %v120_v13  ;;  %v69_v21 = vcombine.high %v61_v16, %v61_v16  ;;  %v145_v22 = vcombine.high %v137_v17, %v137_v17  ;;  %v129_v25 = vcombine.high %v127_v20, %v127_v20  ;;  %v49_v50 = vld [vmem:[#allocation2] sm:$0x3]  ;;  %p462_p6 = pnand %p461_p5, %p455_p2 }
  0x2f   :  { %v146_v27 = vcombine.high %v144_v23, %v144_v23  ;;  %v70_v28 = vcombine.high %v68_v24, %v68_v24  ;;  %v77_v29 = vrot.slane %v61_v16, %v60_v8  ;;  %v84_v34 = vrot.slane %v68_v24, %v60_v8 }
  0x30   :  { %155 = vmatprep.subr.bf16.mxu0 %v128_v19  ;;  %v91_v26 = vrot.slane %v69_v21, %v60_v8  ;;  %195 = vmatprep.subr.bf16.mxu1 %v129_v25 }
  0x31   :  { %156 = vmatpush1.bf16.xpose.msra.mxu0 %v120_v13  ;;  %196 = vmatpush1.bf16.xpose.msra.mxu1 %v127_v20  ;;  %v98_v31 = vrot.slane %v70_v28, %v60_v8  ;;  %v99_v32 = vcombine.high %v77_v29, %v77_v29  ;;  %v100_v35 = vcombine.high %v84_v34, %v84_v34 }
  0x32   :  { %187 = vmatprep.mubr.bf16.mxu0 %v91_v26  ;;  %v101_v30 = vcombine.high %v91_v26, %v91_v26  ;;  %235 = vmatprep.subr.bf16.mxu0 %v145_v22 }
  0x33   :  { %275 = vmatprep.subr.bf16.mxu1 %v146_v27  ;;  %v102_v33 = vcombine.high %v98_v31, %v98_v31 }
  0x34   :  { %227 = vmatprep.mubr.bf16.mxu1 %v101_v30 }
  0x38   :  { %188 = vmatmul.mubr.bf16.vlgmr.msra.gmra.mrb[0].mxu0 %v77_v29  ;;  %228 = vmatmul.mubr.bf16.vlgmr.msra.gmra.mrb[0].mxu1 %v99_v32 }
  0x39   :  { %236 = vmatpush1.bf16.xpose.msra.mxu0 %v137_v17  ;;  %267 = vmatprep.mubr.bf16.mxu0 %v98_v31 }
  0x3a   :  { %276 = vmatpush1.bf16.xpose.msra.mxu1 %v144_v23  ;;  %307 = vmatprep.mubr.bf16.mxu1 %v102_v33 }
  0x40   :  { %268 = vmatmul.mubr.bf16.vlgmr.msra.gmra.mrb[4].mxu0 %v84_v34 }
  0x41   :  { %308 = vmatmul.mubr.bf16.vlgmr.msra.gmra.mrb[4].mxu1 %v100_v35 }
 0x10b   :  { %v189_v37 = vpop.f32.mrb[0].mxu0  ;;  %v229_v40 = vpop.f32.mrb[0].mxu1 }
 0x10c   :  { %v191_v38 = vpop.f32.mrb[1].mxu0  ;;  %v230_v41 = vadd.f32 %v229_v40, %v189_v37  ;;  %v231_v43 = vpop.f32.mrb[1].mxu1 }
 0x10d   :  { %v192_v39 = vpop.f32.mrb[2].mxu0  ;;  %v232_v44 = vpop.f32.mrb[2].mxu1 }
 0x10e   :  { %v193_v42 = vpop.f32.mrb[3].mxu0  ;;  %v233_v45 = vpop.f32.mrb[3].mxu1 }
 0x113   :  { %v269_v46 = vpop.f32.mrb[4].mxu0 }
 0x114   :  { %v270_v47 = vadd.f32 %v269_v46, %v230_v41  ;;  %v271_v48 = vpop.f32.mrb[5].mxu0  ;;  %v309_v51 = vpop.f32.mrb[4].mxu1 }
 0x115   :  { %v272_v49 = vpop.f32.mrb[6].mxu0  ;;  %v311_v54 = vpop.f32.mrb[5].mxu1 }
 0x116   :  { %v310_v52 = vadd.f32 %v309_v51, %v270_v47  ;;  %v273_v53 = vpop.f32.mrb[7].mxu0  ;;  %v312_v55 = vpop.f32.mrb[6].mxu1 }
 0x117   :  { %v313_v57 = vpop.f32.mrb[7].mxu1 }
 0x118   :  { %v315_v56 = vadd.f32 %v310_v52, %v49_v50 }
 0x11a   :  { %317 = vst.msk [vmem:[#allocation2] sm:$0x3] %vm47_vm0, %v315_v56 }
 0x121   :  { %v321_v59 = vld [vmem:[#allocation2] sm:$0x3] }
 0x122   :  { %v324_v60 = vsub.f32 %v321_v59, %v322_v58 }
 0x124   :  { %v325_v61 = vmul.f32 0.5, %v324_v60 }
 0x126   :  { %v326_v63 = vadd.f32 %v325_v61, %v322_v58 }
 0x128   :  { %v327_v1 = vsub.f32 %v326_v63, %v323_v62 }
 0x12a   :  { %v328_v2 = vmul.f32 0.5, %v327_v1 }
 0x12c   :  { %v329_v3 = vadd.f32 %v328_v2, %v323_v62 }
 0x12e   :  { %vm330_vm1 = vcmp.ge.f32.partialorder %v329_v3, 1.0 }
 0x12f   :  { %v398_v4 = vsel %vm330_vm1, 1.0, %v486_v36 }
 0x130   :  { %vm333_vm2 = vcmp.gt.f32.partialorder %v398_v4, 0.0  ;;  %v335_v17 = vsel %vm47_vm0, %v398_v4, -inf }
 0x131   :  { %v339_v5 = vsel %vm333_vm2, %v329_v3, -1e+30  ;;  %v334_v23 = vsel %vm333_vm2, 0.0, %v329_v3 }
 0x132   :  { %v340_v6 = vsel %vm47_vm0, %v339_v5, -inf }
 0x133   :  { %341 = vmax.xlane.f32.xlu0 %v340_v6 }
 0x1c0   :  { %v342_v8 = vpop.xlane.xlu0 %341 }
 0x1c1   :  { %vm345_vm3 = vcmp.eq.f32.partialorder %v339_v5, %v342_v8 }
 0x1c2   :  { %vm346_vm4 = vmand %vm345_vm3, %vm333_vm2 }
 0x1c3   :  { %v347_v9 = vsel %vm346_vm4, %v344_v7, 4 }
 0x1c4   :  { %v348_v10 = vsel %vm47_vm0, %v347_v9, 2147483647 }
 0x1c5   :  { %v350_v11 = vshra.s32 %v348_v10, 16  ;;  %v349_v13 = vand.u32 65535, %v348_v10 }
 0x1c7   :  { %v352_v12 = vcvt.s32.f32 %v350_v11  ;;  %v351_v15 = vcvt.s32.f32 %v349_v13 }
 0x1c9   :  { %353 = vmin.xlane.f32.xlu0 %v352_v12 }
 0x256   :  { %v354_v14 = vpop.xlane.xlu0 %353 }
 0x257   :  { %vm355_vm5 = vcmp.eq.f32.partialorder %v352_v12, %v354_v14  ;;  %v360_v0 = vcvt.f32.s32 %v354_v14 }
 0x258   :  { %v356_v16 = vsel %vm355_vm5, %v351_v15, inf }
 0x259   :  { %357 = vmin.xlane.f32.xlu1 %v356_v16  ;;  %v361_v19 = vshll.u32 %v360_v0, 16 }
 0x25d   :  { %336 = vmax.xlane.f32.xlu1 %v335_v17 }
 0x26e   :  { %373 = vrot.lane.b32.xlu1 %v326_v63, %s487_s2 }
 0x2e6   :  { %v358_v18 = vpop.xlane.xlu1 %357 }
 0x2e7   :  { %v359_v20 = vcvt.f32.s32 %v358_v18 }
 0x2e9   :  { %v362_v21 = vadd.s32 %v361_v19, %v359_v20 }
 0x2ea   :  { %v337_v22 = vpop.xlane.xlu1 %336 }
 0x2eb   :  { %vm363_vm6 = vcmp.eq.s32.totalorder %v344_v7, %v362_v21  ;;  %vm338_vm7 = vcmp.gt.f32.partialorder %v337_v22, 0.0 }
 0x2ec   :  { %v364_v24 = vsel %vm363_vm6, %v334_v23, -5.0 }
 0x2ed   :  { %v367_v25 = vsel %vm338_vm7, %v364_v24, %v334_v23 }
 0x2ee   :  { %369 = vrot.lane.b32.xlu0 %v367_v25, %s488_s3  ;;  %v374_v27 = vpop.permute.xlu1 %373 }
 0x360   :  { %v370_v26 = vpop.permute.xlu0 %369 }
 0x361   :  { %v377_v28 = vsel %vm376_vm8, %v398_v4, %v370_v26 }
 0x362   :  { %v379_v29 = vsel %vm378_vm9, %v377_v28, %v374_v27 }
 0x363   :  { %381 = vst.msk [vmem:[#allocation8] sm:$0x3] %vm380_vm10, %v379_v29 }
 0x364   :  { %465 = shalt.err (!%p462_p6)
}
 0x365   :  { %s466_s20 = scalar_lea.hbm %s571_s4, 32 }
 0x366   :  { %p467_p7 = scmp.ne.s32.totalorder %s571_s4, %s466_s20  ;;  %p470_p8 = scmp.lt.u32.totalorder %s466_s20, %s571_s4 }
 0x368   :  { %p472_p9 = pnand %p470_p8, %p467_p7 }
 0x36a   :  { %475 = shalt.err (!%p472_p9)
}
 0x36b   :  { %391 = dma.vmem_to_hbm [thread:$0]  %s389_s16, 32, %s571_s4, [#allocation5]  }
 0x36c   :  { %480 = dma.done.wait [#allocation5], 32  }
 0x36d   :  { %481 = vsyncadd [#allocation5], 4294967264 }
 0x36e   :  { %395 = vsyncpa [#allocation4], 1 }
 0x36f   :  { %396 = vsyncpa [#allocation7], 1 }
 0x370   :  { %397 = vsyncpa [#allocation5], 1 }

</bundles_post_ra>
